<compile_context>
chip_gen: v6e
topology: v6e:2x2x1
jax: 0.10.0
libtpu: 0.0.40
codegen_flags: <defaults>
</compile_context>

<pallas_src>
import jax
import jax.numpy as jnp
from jax.experimental import pallas as pl
from jax.experimental.pallas import tpu as pltpu


# ----------------------------- kernel ---------------------------------------


def _make_linear_kernel(tk, nk, d):
    """Build a kernel computing a (TM, 2) tile of X @ W^T + b with K accumulation."""
    rem = d - (nk - 1) * tk              # valid feature cols in the last K block
    ragged_k = (nk > 1) and (rem != tk)  # static: mask only if last K block is ragged

    def kernel(x_ref, wt_ref, b_ref, o_ref, acc_ref):
        k = pl.program_id(1)

        @pl.when(k == 0)
        def _init():
            acc_ref[...] = jnp.zeros_like(acc_ref)

        x = x_ref[...]
        w = wt_ref[...]
        if ragged_k:
            # Zero the out-of-bounds tail of the last K block in BOTH operands so
            # padded garbage (possibly NaN) can never reach the accumulator.
            valid = jnp.where(k == nk - 1, rem, tk)
            col = jax.lax.broadcasted_iota(jnp.int32, x.shape, 1)
            x = jnp.where(col < valid, x, jnp.zeros_like(x))
            row = jax.lax.broadcasted_iota(jnp.int32, w.shape, 0)
            w = jnp.where(row < valid, w, jnp.zeros_like(w))

        acc_ref[...] += jnp.dot(
            x, w,
            precision=jax.lax.Precision.HIGHEST,
            preferred_element_type=jnp.float32,
        )

        @pl.when(k == pl.num_programs(1) - 1)
        def _finalize():
            o_ref[...] = (acc_ref[...] + b_ref[...]).astype(o_ref.dtype)

    return kernel


# ------------------------- tiling / VMEM policy ------------------------------


def _vmem_capacity_bytes():
    try:
        info = pltpu.get_tpu_info()
        for name in ("vmem_capacity_bytes", "vmem_size_bytes", "vmem_bytes"):
            cap = getattr(info, name, None)
            if cap:
                return int(cap)
    except Exception:
        pass
    return 128 * 1024 * 1024           # v5e / v6e physical VMEM


def _vmem_budgets():
    """Returns (vmem_limit_bytes, per-tile X byte budget)."""
    cap = _vmem_capacity_bytes()
    if cap <= 64 * 1024 * 1024:        # v7x: 64 MiB per TensorCore
        return 56 * 1024 * 1024, 20 * 1024 * 1024
    return 96 * 1024 * 1024, 32 * 1024 * 1024   # v5e / v6e: 128 MiB physical


def _round_up(x, m):
    return ((x + m - 1) // m) * m


def _pick_tiles(batch, d, itemsize):
    _, x_tile_bytes = _vmem_budgets()

    # K (feature) tiling only when even an 8-row X tile would overflow the
    # per-tile byte budget (very large input_size).
    if 8 * d * itemsize <= x_tile_bytes:
        tk, nk = d, 1
    else:
        tk = max(128, (x_tile_bytes // (8 * itemsize)) // 128 * 128)
        nk = pl.cdiv(d, tk)

    # Row tiling: biggest tile whose double-buffered X stays under budget.
    tm = max(8, (x_tile_bytes // (tk * itemsize)) // 8 * 8)
    if batch <= 8:
        tm = batch                     # single block; block == full dim is legal
    else:
        # Keep >= 2 row blocks so the "parallel" axis can use both v7x TCs.
        tm = max(8, min(tm, _round_up(pl.cdiv(batch, 2), 8)))
    return tm, tk, nk


# ------------------------------ wrapper --------------------------------------


def feat_analysis_forward(x, weight, bias, *, tm=None, tk=None):
    """x: (B, D); weight: (2, D) (PyTorch nn.Linear layout); bias: (2,).
    Returns (B, 2) of x.dtype == x @ weight.T + bias."""
    B, D = x.shape
    assert weight.shape == (2, D) and bias.shape == (2,)

    itemsize = jnp.dtype(x.dtype).itemsize
    auto_tm, auto_tk, _ = _pick_tiles(B, D, itemsize)
    tm = auto_tm if tm is None else tm
    tk = auto_tk if tk is None else tk
    nk = pl.cdiv(D, tk)

    vmem_limit, _ = _vmem_budgets()

    wt = weight.T.astype(x.dtype)                 # (D, 2): X streams as the MXU LHS
    b2 = bias.reshape(1, 2).astype(jnp.float32)   # tiny resident VMEM block

    cost = pl.CostEstimate(
        flops=2 * B * D * 2,
        transcendentals=0,
        bytes_accessed=itemsize * (B * D + 2 * D + 2 * B) + 4 * 2,
    )

    kernel = _make_linear_kernel(tk, nk, D)

    return pl.pallas_call(
        kernel,
        out_shape=jax.ShapeDtypeStruct((B, 2), x.dtype),
        grid_spec=pltpu.PrefetchScalarGridSpec(
            num_scalar_prefetch=0,
            grid=(pl.cdiv(B, tm), nk),
            in_specs=[
                # X: the only HBM-heavy operand, streamed & double-buffered.
                pl.BlockSpec((tm, tk), lambda i, k: (i, k)),
                # W^T: tiny; same block across the row axis -> effectively resident.
                pl.BlockSpec((tk, 2), lambda i, k: (k, 0)),
                # bias: tiny resident block.
                pl.BlockSpec((1, 2), lambda i, k: (0, 0)),
            ],
            # Output written directly in nn.Linear layout (B, 2).
            out_specs=pl.BlockSpec((tm, 2), lambda i, k: (i, 0)),
            scratch_shapes=[pltpu.VMEM((tm, 2), jnp.float32)],
        ),
        compiler_params=pltpu.CompilerParams(
            dimension_semantics=("parallel", "arbitrary"),
            vmem_limit_bytes=vmem_limit,
        ),
        cost_estimate=cost,
    )(x, wt, b2)


# ------------------------------- demo ----------------------------------------


def _reference(x, w, b):
    return jnp.dot(x, w.T, precision=jax.lax.Precision.HIGHEST) + b


if __name__ == "__main__":
    key = jax.random.PRNGKey(0)

    def init_params(k, input_size):
        kw, kb = jax.random.split(k)
        bound = 1.0 / (input_size ** 0.5)
        w = jax.random.uniform(kw, (2, input_size), jnp.float32, -bound, bound)
        b = jax.random.uniform(kb, (2,), jnp.float32, -bound, bound)
        return w, b

    # --- primary demo shape: batch=8, input_size=32 ---------------------------
    k0, k1, k2, k3 = jax.random.split(key, 4)
    B, D = 8, 32
    w, b = init_params(k0, D)
    x = jax.random.normal(k1, (B, D), jnp.float32)
    out = jax.block_until_ready(feat_analysis_forward(x, w, b))
    assert out.shape == (B, 2)
    assert jnp.allclose(out, _reference(x, w, b), atol=1e-5, rtol=1e-5)

    # --- ragged batch (B % 8 != 0) + two row blocks ---------------------------
    B2, D2 = 20, 96
    w2, b2 = init_params(k2, D2)
    x2 = jax.random.normal(k3, (B2, D2), jnp.float32)
    out2 = jax.block_until_ready(feat_analysis_forward(x2, w2, b2))
    assert jnp.allclose(out2, _reference(x2, w2, b2), atol=1e-4, rtol=1e-4)

    # --- forced K-tiling: exact split and ragged last K block -----------------
    k4, k5, k6, k7 = jax.random.split(k3, 4)
    B3, D3 = 16, 384                      # nk = 3, exact
    w3, b3 = init_params(k4, D3)
    x3 = jax.random.normal(k5, (B3, D3), jnp.float32)
    out3 = jax.block_until_ready(feat_analysis_forward(x3, w3, b3, tk=128))
    assert jnp.allclose(out3, _reference(x3, w3, b3), atol=1e-4, rtol=1e-4)

    B4, D4 = 16, 320                      # nk = 3, ragged last block (rem = 64)
    w4, b4 = init_params(k6, D4)
    x4 = jax.random.normal(k7, (B4, D4), jnp.float32)
    out4 = jax.block_until_ready(feat_analysis_forward(x4, w4, b4, tk=128))
    assert jnp.allclose(out4, _reference(x4, w4, b4), atol=1e-4, rtol=1e-4)

    print("KERNEL_OK")
</pallas_src>

<mosaic_0001>
module attributes {stable_mosaic.version = 11 : i64} {
  func.func @kernel(%arg0: i32, %arg1: i32, %arg2: memref<8x32xf32, #tpu.memory_space<vmem>>, %arg3: memref<32x2xf32, #tpu.memory_space<vmem>>, %arg4: memref<1x2xf32, #tpu.memory_space<vmem>>, %arg5: memref<8x2xf32, #tpu.memory_space<vmem>>, %arg6: memref<8x2xf32, #tpu.memory_space<vmem>>) attributes {dimension_semantics = [#tpu.dimension_semantics<parallel>, #tpu.dimension_semantics<arbitrary>], iteration_bounds = array<i64: 1, 1>, scalar_prefetch = 0 : i64, scratch_operands = 1 : i64, tpu.core_type = #tpu.core_type<tc>, window_params = [{transform_indices = @transform_0, window_bounds = array<i64: 8, 32>}, {transform_indices = @transform_1, window_bounds = array<i64: 32, 2>}, {pipeline_mode = #tpu.pipeline_mode<synchronous>, transform_indices = @transform_2, window_bounds = array<i64: 1, 2>}, {transform_indices = @transform_3, window_bounds = array<i64: 8, 2>}]} {
    %c0_i32 = arith.constant 0 : i32
    %0 = arith.cmpi eq, %arg1, %c0_i32 : i32
    %1 = arith.extui %0 : i1 to i32
    %c0_i32_0 = arith.constant 0 : i32
    %2 = arith.cmpi ne, %1, %c0_i32_0 : i32
    scf.if %2 {
      %cst_10 = arith.constant 0.000000e+00 : f32
      %12 = vector.broadcast %cst_10 : f32 to vector<8x2xf32>
      %c0_11 = arith.constant 0 : index
      %c0_12 = arith.constant 0 : index
      %13 = vector.load %arg6[%c0_11, %c0_12] : memref<8x2xf32, #tpu.memory_space<vmem>>, vector<8x2xf32>
      tpu.vector_store %arg6[%c0_11, %c0_12], %12 {strides = array<i32>} : memref<8x2xf32, #tpu.memory_space<vmem>>, vector<8x2xf32>,
    } else {
    }
    %c0 = arith.constant 0 : index
    %c0_1 = arith.constant 0 : index
    %3 = vector.load %arg2[%c0, %c0_1] : memref<8x32xf32, #tpu.memory_space<vmem>>, vector<8x32xf32>
    %c0_2 = arith.constant 0 : index
    %c0_3 = arith.constant 0 : index
    %4 = vector.load %arg3[%c0_2, %c0_3] : memref<32x2xf32, #tpu.memory_space<vmem>>, vector<32x2xf32>
    %c0_4 = arith.constant 0 : index
    %c0_5 = arith.constant 0 : index
    %5 = vector.load %arg6[%c0_4, %c0_5] : memref<8x2xf32, #tpu.memory_space<vmem>>, vector<8x2xf32>
    %cst = arith.constant dense<0.000000e+00> : vector<8x2xf32>
    %6 = tpu.matmul %3, %4, %cst {dimension_numbers = #tpu.dot_dimension_numbers<[1], [0], [0], [1], [0, 0, 1, 1], [], []>, precision = #tpu.contract_precision<fp32>} : vector<8x32xf32>, vector<32x2xf32>, vector<8x2xf32> -> vector<8x2xf32>
    %7 = arith.addf %5, %6 : vector<8x2xf32>
    %c0_6 = arith.constant 0 : index
    %c0_7 = arith.constant 0 : index
    %8 = vector.load %arg6[%c0_6, %c0_7] : memref<8x2xf32, #tpu.memory_space<vmem>>, vector<8x2xf32>
    tpu.vector_store %arg6[%c0_6, %c0_7], %7 {strides = array<i32>} : memref<8x2xf32, #tpu.memory_space<vmem>>, vector<8x2xf32>,
    %c0_i32_8 = arith.constant 0 : i32
    %9 = arith.cmpi eq, %arg1, %c0_i32_8 : i32
    %10 = arith.extui %9 : i1 to i32
    %c0_i32_9 = arith.constant 0 : i32
    %11 = arith.cmpi ne, %10, %c0_i32_9 : i32
    scf.if %11 {
      %c0_10 = arith.constant 0 : index
      %c0_11 = arith.constant 0 : index
      %12 = vector.load %arg6[%c0_10, %c0_11] : memref<8x2xf32, #tpu.memory_space<vmem>>, vector<8x2xf32>
      %c0_12 = arith.constant 0 : index
      %c0_13 = arith.constant 0 : index
      %13 = vector.load %arg4[%c0_12, %c0_13] : memref<1x2xf32, #tpu.memory_space<vmem>>, vector<1x2xf32>
      %14 = vector.broadcast %13 : vector<1x2xf32> to vector<8x2xf32>
      %15 = arith.addf %12, %14 : vector<8x2xf32>
      %c0_14 = arith.constant 0 : index
      %c0_15 = arith.constant 0 : index
      %16 = vector.load %arg5[%c0_14, %c0_15] : memref<8x2xf32, #tpu.memory_space<vmem>>, vector<8x2xf32>
      tpu.vector_store %arg5[%c0_14, %c0_15], %15 {strides = array<i32>} : memref<8x2xf32, #tpu.memory_space<vmem>>, vector<8x2xf32>,
    } else {
    }
    return
  }
  func.func @transform_0(%arg0: i32, %arg1: i32) -> (i32, i32) {
    %c0_i32 = arith.constant 0 : i32
    return %arg0, %arg1 : i32, i32
  }
  func.func @transform_1(%arg0: i32, %arg1: i32) -> (i32, i32) {
    %c0_i32 = arith.constant 0 : i32
    %c0_i32_0 = arith.constant 0 : i32
    return %arg1, %c0_i32 : i32, i32
  }
  func.func @transform_2(%arg0: i32, %arg1: i32) -> (i32, i32) {
    %c0_i32 = arith.constant 0 : i32
    %c0_i32_0 = arith.constant 0 : i32
    %c0_i32_1 = arith.constant 0 : i32
    return %c0_i32, %c0_i32_0 : i32, i32
  }
  func.func @transform_3(%arg0: i32, %arg1: i32) -> (i32, i32) {
    %c0_i32 = arith.constant 0 : i32
    %c0_i32_0 = arith.constant 0 : i32
    return %arg0, %c0_i32 : i32, i32
  }
}

</mosaic_0001>

<bundles_post_ra>
// kernel: tpu_custom_call.1
= control target key start
LH: loop header
LB: loop body
LE: loop exit
PB: predicated region body
PF: predicated region fallthrough
CT: control target
= control target key end

     0   :  { %vm26_vm0 = vcmask 261120   ;;  %v634_v0 = vmov 0.0   ;;  %vm635_vm1 = vmmov 0   ;;  %vm18_vm2 = vcmask 15360   ;;  %s748_s1 = inlined_call_operand.vmem [shape: f32[32,2], index: 1, kind: input, shape index: {}]   ;;  %s749_s0 = inlined_call_operand.vmem [shape: f32[8,32], index: 0, kind: input, shape index: {}]   ;;  %s750_s2 = inlined_call_operand.vmem [shape: f32[1,2], index: 2, kind: input, shape index: {}]   ;;  %s751_s3 = inlined_call_operand.vmem [shape: f32[8,2], index: 3, kind: output, shape index: {}]  }
   0x1   :  { %566 = vmatprep.subr.mxu0 %v634_v0  ;;  %v24_v1 = vld [vmem:[%s748_s1 + $0x18] sm:$0xff]  ;;  %v23_v2 = vld [vmem:[%s748_s1 + $0x10] sm:$0xff]  ;;  %v22_v3 = vld [vmem:[%s748_s1 + $0x8] sm:$0xff]  ;;  %577 = vmatprep.subr.mxu1 %v634_v0  ;;  %19 = vst.msk [vmem:[#allocation2] sm:$0xff] %vm18_vm2, %v634_v0 }
   0x2   :  { %v667_v4 = vand.u32 4294901760, %v24_v1  ;;  %v669_v5 = vand.u32 4294901760, %v23_v2  ;;  %v671_v6 = vand.u32 4294901760, %v22_v3  ;;  %v21_v7 = vld [vmem:[%s748_s1] sm:$0xff]  ;;  %574 = vmatprep.mubr.msk.f32.mxu0 %vm635_vm1, %v634_v0  ;;  %585 = vmatprep.mubr.msk.f32.mxu1 %vm635_vm1, %v634_v0 }
   0x3   :  { %v20_v8 = vld [vmem:[%s749_s0] sm:$0xff]  ;;  %v683_v9 = vand.u32 4294901760, %v21_v7 }
   0x4   :  { %v28_v10 = vsel %vm26_vm0, %v20_v8, 0  ;;  %567 = vmatpush3.msra.mxu0 %v667_v4  ;;  %v135_v11 = vsub.f32 %v24_v1, %v667_v4  ;;  %v142_v13 = vsub.f32 %v23_v2, %v669_v5  ;;  %v149_v14 = vsub.f32 %v22_v3, %v671_v6  ;;  %v535_v51 = vld [vmem:[%s750_s2] ss:$0 sm:$0xff] }
   0x5   :  { %v688_v12 = vand.u32 4294901760, %v28_v10  ;;  %568 = vmatprep.subr.mxu0 %v634_v0  ;;  %v156_v15 = vsub.f32 %v21_v7, %v683_v9 }
   0x6   :  { %569 = vmatpush3.msra.mxu0 %v669_v5  ;;  %v136_v16 = vand.u32 4294901760, %v135_v11  ;;  %v143_v18 = vand.u32 4294901760, %v142_v13  ;;  %v150_v19 = vand.u32 4294901760, %v149_v14 }
   0x7   :  { %v100_v17 = vsub.f32 %v28_v10, %v688_v12  ;;  %570 = vmatprep.subr.mxu0 %v634_v0  ;;  %v157_v20 = vand.u32 4294901760, %v156_v15 }
   0x8   :  { %571 = vmatpush3.msra.mxu0 %v671_v6  ;;  %v137_v21 = vsub.f32 %v135_v11, %v136_v16  ;;  %v144_v23 = vsub.f32 %v142_v13, %v143_v18  ;;  %v151_v24 = vsub.f32 %v149_v14, %v150_v19  ;;  %v25_v46 = vld [vmem:[#allocation2] sm:$0xff] }
   0x9   :  { %v101_v22 = vand.u32 4294901760, %v100_v17  ;;  %572 = vmatprep.subr.mxu0 %v634_v0  ;;  %v158_v28 = vsub.f32 %v156_v15, %v157_v20 }
   0xa   :  { %573 = vmatpush3.msra.mxu0 %v683_v9  ;;  %v138_v25 = vand.u32 4294901760, %v137_v21  ;;  %v145_v27 = vand.u32 4294901760, %v144_v23  ;;  %v152_v30 = vand.u32 4294901760, %v151_v24 }
   0xb   :  { %v102_v26 = vsub.f32 %v100_v17, %v101_v22  ;;  %588 = vmatprep.subr.mxu0 %v634_v0  ;;  %v159_v31 = vand.u32 4294901760, %v158_v28 }
   0xc   :  { %578 = vmatpush3.msra.mxu1 %v138_v25 }
   0xd   :  { %v103_v29 = vand.u32 4294901760, %v102_v26  ;;  %579 = vmatprep.subr.mxu1 %v634_v0 }
   0xe   :  { %580 = vmatpush3.msra.mxu1 %v145_v27 }
   0xf   :  { %575 = vmatmul.mubr.f32.vlgmr.msra.gmra.mxu0 %v103_v29  ;;  %581 = vmatprep.subr.mxu1 %v634_v0 }
  0x10   :  { %589 = vmatpush3.msra.mxu0 %v135_v11  ;;  %582 = vmatpush3.msra.mxu1 %v152_v30 }
  0x11   :  { %590 = vmatprep.subr.mxu0 %v634_v0  ;;  %583 = vmatprep.subr.mxu1 %v634_v0 }
  0x12   :  { %591 = vmatpush3.msra.mxu0 %v142_v13  ;;  %584 = vmatpush3.msra.mxu1 %v159_v31 }
  0x13   :  { %592 = vmatprep.subr.mxu0 %v634_v0  ;;  %586 = vmatmul.mubr.f32.vlgmr.msra.gmra.mxu1 %v688_v12 }
  0x14   :  { %593 = vmatpush3.msra.mxu0 %v149_v14  ;;  %599 = vmatprep.subr.mxu1 %v634_v0 }
  0x15   :  { %594 = vmatprep.subr.mxu0 %v634_v0  ;;  %596 = vmatprep.mubr.msk.f32.mxu0 %vm635_vm1, %v634_v0 }
  0x16   :  { %595 = vmatpush3.msra.mxu0 %v156_v15  ;;  %600 = vmatpush3.msra.mxu1 %v667_v4 }
  0x17   :  { %597 = vmatmul.mubr.f32.vlgmr.msra.gmra.mxu0 %v100_v17  ;;  %601 = vmatprep.subr.mxu1 %v634_v0 }
  0x18   :  { %610 = vmatprep.subr.mxu0 %v634_v0  ;;  %602 = vmatpush3.msra.mxu1 %v669_v5 }
  0x19   :  { %611 = vmatpush3.msra.mxu0 %v136_v16  ;;  %603 = vmatprep.subr.mxu1 %v634_v0 }
  0x1a   :  { %612 = vmatprep.subr.mxu0 %v634_v0  ;;  %604 = vmatpush3.msra.mxu1 %v671_v6 }
  0x1b   :  { %613 = vmatpush3.msra.mxu0 %v143_v18  ;;  %605 = vmatprep.subr.mxu1 %v634_v0 }
  0x1c   :  { %614 = vmatprep.subr.mxu0 %v634_v0  ;;  %606 = vmatpush3.msra.mxu1 %v683_v9 }
  0x1d   :  { %607 = vmatprep.mubr.msk.f32.mxu1 %vm635_vm1, %v634_v0  ;;  %615 = vmatpush3.msra.mxu0 %v150_v19 }
  0x1e   :  { %608 = vmatmul.mubr.f32.vlgmr.msra.gmra.mxu1 %v101_v22  ;;  %616 = vmatprep.subr.mxu0 %v634_v0 }
  0x1f   :  { %621 = vmatprep.subr.mxu1 %v634_v0  ;;  %617 = vmatpush3.msra.mxu0 %v157_v20 }
  0x20   :  { %618 = vmatprep.mubr.msk.f32.mxu0 %vm635_vm1, %v634_v0  ;;  %622 = vmatpush3.msra.mxu1 %v667_v4 }
  0x21   :  { %619 = vmatmul.mubr.f32.vlgmr.msra.gmra.mxu0 %v688_v12  ;;  %623 = vmatprep.subr.mxu1 %v634_v0 }
  0x22   :  { %629 = vmatprep.mubr.msk.f32.mxu1 %vm635_vm1, %v634_v0  ;;  %624 = vmatpush3.msra.mxu1 %v669_v5 }
  0x23   :  { %625 = vmatprep.subr.mxu1 %v634_v0 }
  0x24   :  { %626 = vmatpush3.msra.mxu1 %v671_v6 }
  0x25   :  { %627 = vmatprep.subr.mxu1 %v634_v0 }
  0x26   :  { %628 = vmatpush3.msra.mxu1 %v683_v9 }
  0x27   :  { %630 = vmatmul.mubr.f32.vlgmr.msra.gmra.mxu1 %v688_v12 }
  0xcf   :  { %v105_v32 = vpop.f32.mrf.mxu0 }
  0xd1   :  { %v576_v33 = vpop.f32.mrf.mxu0 }
  0xd3   :  { %v196_v34 = vpop.f32.mrf.mxu1 }
  0xd4   :  { %v197_v38 = vadd.f32 %v196_v34, %v105_v32 }
  0xd5   :  { %v587_v35 = vpop.f32.mrf.mxu1 }
  0xd7   :  { %v276_v36 = vpop.f32.mrf.mxu0 }
  0xd8   :  { %v277_v41 = vadd.f32 %v276_v36, %v197_v38 }
  0xd9   :  { %v598_v37 = vpop.f32.mrf.mxu0 }
  0xde   :  { %v353_v39 = vpop.f32.mrf.mxu1 }
  0xdf   :  { %v354_v43 = vadd.f32 %v353_v39, %v277_v41 }
  0xe0   :  { %v609_v40 = vpop.f32.mrf.mxu1 }
  0xe1   :  { %v436_v42 = vpop.f32.mrf.mxu0 }
  0xe2   :  { %v437_v45 = vadd.f32 %v436_v42, %v354_v43 }
  0xe3   :  { %v620_v44 = vpop.f32.mrf.mxu0 }
  0xe7   :  { %v511_v47 = vpop.f32.mrf.mxu1 }
  0xe8   :  { %v512_v48 = vadd.f32 %v511_v47, %v437_v45 }
  0xe9   :  { %v631_v49 = vpop.f32.mrf.mxu1 }
  0xea   :  { %v515_v50 = vadd.f32 %v512_v48, %v25_v46 }
  0xec   :  { %517 = vst.msk [vmem:[#allocation2] sm:$0xff] %vm18_vm2, %v515_v50 }
  0xf3   :  { %v521_v52 = vld [vmem:[#allocation2] sm:$0xff] }
  0xf4   :  { %v529_v53 = vadd.f32 %v535_v51, %v521_v52 }
  0xf6   :  { %530 = vst.msk [vmem:[%s751_s3] sm:$0xff] %vm18_vm2, %v529_v53 }

</bundles_post_ra>
